<compile_context>
chip_gen: v7x
topology: tpu7x:2x2x1
jax: 0.10.0
libtpu: 0.0.40
codegen_flags: <defaults>
</compile_context>

<pallas_src>
import functools

import jax
import jax.numpy as jnp
from jax.experimental import pallas as pl
from jax.experimental.pallas import tpu as pltpu

LN_EPS = 1e-5
_OUT_LANES = 128  # lane-dense output slab width


def _round_up(n, m):
    return ((n + m - 1) // m) * m


def transformer_kernel(
    x_ref,
    w_uvh_ref, b_uvh_ref,
    r1_w1_ref, r1_b1_ref, r1_w2_ref, r1_b2_ref, r1_g_ref, r1_be_ref,
    r2_w1_ref, r2_b1_ref, r2_w2_ref, r2_b2_ref, r2_g_ref, r2_be_ref,
    wO_ref, bO_ref,
    out_ref,
    *, N,
):
    x = x_ref[...]                                              # (TB, K)

    # Fused U|V|H projection: one MXU pass over a 3N-wide weight slab.
    fused = jnp.dot(x, w_uvh_ref[...], preferred_element_type=jnp.float32)
    fused = jnp.maximum(fused + b_uvh_ref[...], 0.0)            # (TB, 3N)
    u = fused[:, 0:N]
    v = fused[:, N:2 * N]
    h = fused[:, 2 * N:3 * N]
    v_minus_u = v - u                                           # reused by both ResBlocks

    def res_block(h, w1, b1, w2, b2, gamma, beta):
        z = jnp.maximum(jnp.dot(h, w1, preferred_element_type=jnp.float32) + b1, 0.0)
        z = jnp.maximum(jnp.dot(z, w2, preferred_element_type=jnp.float32) + b2, 0.0)
        mix = u + z * v_minus_u                                 # == (1-z)*u + z*v
        # LayerNorm with independent lane reductions (E[x^2] - E[x]^2).
        mean = jnp.mean(mix, axis=-1, keepdims=True)
        mean_sq = jnp.mean(mix * mix, axis=-1, keepdims=True)
        var = mean_sq - mean * mean
        inv = jax.lax.rsqrt(var + LN_EPS)
        return (mix - mean) * inv * gamma + beta

    h = res_block(h, r1_w1_ref[...], r1_b1_ref[...], r1_w2_ref[...], r1_b2_ref[...],
                  r1_g_ref[...], r1_be_ref[...])
    h = res_block(h, r2_w1_ref[...], r2_b1_ref[...], r2_w2_ref[...], r2_b2_ref[...],
                  r2_g_ref[...], r2_be_ref[...])

    # Final N -> 1 projection as VPU multiply + lane reduction (no 1-column MXU pass).
    f = jnp.sum(h * wO_ref[...], axis=-1, keepdims=True) + bO_ref[0, 0]   # (TB, 1)

    # Lane-dense store: broadcast across the 128-wide output slab (col 0 is real).
    out_ref[...] = jnp.broadcast_to(f, out_ref.shape).astype(out_ref.dtype)


@functools.partial(jax.jit, static_argnames=("block_rows",))
def transformer_forward(x, params, block_rows=512):
    """x: (B, num_inputs) f32. params: dict of f32 arrays (see init_params)."""
    assert block_rows % 8 == 0
    B, K = x.shape
    N = params["wU"].shape[1]

    TB = min(block_rows, _round_up(B, 8))
    B_pad = _round_up(B, TB)
    if B_pad != B:
        x = jnp.pad(x, ((0, B_pad - B), (0, 0)))

    # Fuse the three input projections into one (K, 3N) slab.
    w_uvh = jnp.concatenate([params["wU"], params["wV"], params["wH"]], axis=1)
    b_uvh = jnp.concatenate([params["bU"], params["bV"], params["bH"]], axis=1)
    wO_row = params["wO"].reshape(1, N)

    args = (
        x,
        w_uvh, b_uvh,
        params["r1_w1"], params["r1_b1"], params["r1_w2"], params["r1_b2"],
        params["r1_g"], params["r1_be"],
        params["r2_w1"], params["r2_b1"], params["r2_w2"], params["r2_b2"],
        params["r2_g"], params["r2_be"],
        wO_row, params["bO"],
    )

    grid = (B_pad // TB,)

    def resident(a):  # whole-array block, VMEM-resident across all grid steps
        return pl.BlockSpec(a.shape, lambda i: (0,) * a.ndim)

    in_specs = [pl.BlockSpec((TB, K), lambda i: (i, 0))]          # x: tiled over batch
    in_specs += [resident(a) for a in args[1:-1]]                 # weights / biases / LN params
    in_specs += [pl.BlockSpec(memory_space=pltpu.MemorySpace.SMEM)]  # scalar bO

    out_specs = pl.BlockSpec((TB, _OUT_LANES), lambda i: (i, 0))

    # Advisory cost estimate for the XLA scheduler.
    flops_per_row = 2 * K * 3 * N + 16 * N * N + 2 * N
    weight_bytes = 4 * sum(int(a.size) for a in args[1:])
    cost = pl.CostEstimate(
        flops=int(B_pad * flops_per_row),
        transcendentals=int(2 * B_pad),
        bytes_accessed=int(4 * (B_pad * K + B_pad * _OUT_LANES) + weight_bytes),
    )

    out = pl.pallas_call(
        functools.partial(transformer_kernel, N=N),
        out_shape=jax.ShapeDtypeStruct((B_pad, _OUT_LANES), jnp.float32),
        grid=grid,
        in_specs=in_specs,
        out_specs=out_specs,
        compiler_params=pltpu.CompilerParams(dimension_semantics=("parallel",)),
        cost_estimate=cost,
    )(*args)

    return out[:B, :1]


def _uniform(key, shape, bound):
    return jax.random.uniform(key, shape, jnp.float32, minval=-bound, maxval=bound)


def init_params(key, num_inputs, num_neurals):
    """Deterministic init mimicking PyTorch nn.Linear default (U(-1/sqrt(fan_in), +))."""
    N = num_neurals
    ks = jax.random.split(key, 20)
    it = iter(range(20))

    def linear(kw, kb, fan_in, fan_out):
        b = 1.0 / jnp.sqrt(jnp.float32(fan_in))
        # stored transposed: (in, out) so kernel does x @ W
        w = _uniform(kw, (fan_in, fan_out), b)
        bias = _uniform(kb, (1, fan_out), b)
        return w, bias

    p = {}
    p["wU"], p["bU"] = linear(ks[next(it)], ks[next(it)], num_inputs, N)
    p["wV"], p["bV"] = linear(ks[next(it)], ks[next(it)], num_inputs, N)
    p["wH"], p["bH"] = linear(ks[next(it)], ks[next(it)], num_inputs, N)

    # ResBlock 1: Linear(N, 2N), Linear(2N, N), LayerNorm(N) (weight=1, bias=0)
    p["r1_w1"], p["r1_b1"] = linear(ks[next(it)], ks[next(it)], N, 2 * N)
    p["r1_w2"], p["r1_b2"] = linear(ks[next(it)], ks[next(it)], 2 * N, N)
    p["r1_g"] = jnp.ones((1, N), jnp.float32)
    p["r1_be"] = jnp.zeros((1, N), jnp.float32)

    # ResBlock 2
    p["r2_w1"], p["r2_b1"] = linear(ks[next(it)], ks[next(it)], N, 2 * N)
    p["r2_w2"], p["r2_b2"] = linear(ks[next(it)], ks[next(it)], 2 * N, N)
    p["r2_g"] = jnp.ones((1, N), jnp.float32)
    p["r2_be"] = jnp.zeros((1, N), jnp.float32)

    # output layer: N -> 1
    p["wO"], p["bO"] = linear(ks[next(it)], ks[next(it)], N, 1)
    return p


def reference_forward(x, p):
    """Pure-JAX reference identical to the PyTorch module (for a sanity check)."""
    def lin_relu(x, w, b):
        return jnp.maximum(x @ w + b, 0.0)

    def ln(x, g, be):
        m = jnp.mean(x, axis=-1, keepdims=True)
        v = jnp.mean((x - m) ** 2, axis=-1, keepdims=True)
        return (x - m) / jnp.sqrt(v + LN_EPS) * g + be

    def res(h, u, v, w1, b1, w2, b2, g, be):
        z = lin_relu(lin_relu(h, w1, b1), w2, b2)
        return ln((1 - z) * u + z * v, g, be)

    u = lin_relu(x, p["wU"], p["bU"])
    v = lin_relu(x, p["wV"], p["bV"])
    h1 = lin_relu(x, p["wH"], p["bH"])
    h2 = res(h1, u, v, p["r1_w1"], p["r1_b1"], p["r1_w2"], p["r1_b2"], p["r1_g"], p["r1_be"])
    h3 = res(h2, u, v, p["r2_w1"], p["r2_b1"], p["r2_w2"], p["r2_b2"], p["r2_g"], p["r2_be"])
    return h3 @ p["wO"] + p["bO"]


if __name__ == "__main__":
    num_inputs = 8
    num_neurals = 32
    batch = 8

    key = jax.random.PRNGKey(0)
    kx, kp = jax.random.split(key)
    x = jax.random.normal(kx, (batch, num_inputs), jnp.float32)
    params = init_params(kp, num_inputs, num_neurals)

    out = jax.block_until_ready(transformer_forward(x, params))
    ref = reference_forward(x, params)
    assert out.shape == (batch, 1)
    assert jnp.allclose(out, ref, atol=1e-4, rtol=1e-4), (out, ref)

    # Larger, non-divisible batch to exercise the multi-block grid + padding path.
    x2 = jax.random.normal(jax.random.PRNGKey(1), (300, num_inputs), jnp.float32)
    out2 = jax.block_until_ready(transformer_forward(x2, params, block_rows=128))
    ref2 = reference_forward(x2, params)
    assert out2.shape == (300, 1)
    assert jnp.allclose(out2, ref2, atol=1e-4, rtol=1e-4)

    print("KERNEL_OK")
</pallas_src>

<mosaic_0001>
module attributes {stable_mosaic.version = 11 : i64} {
  func.func @transformer_kernel(%arg0: i32, %arg1: memref<8x8xf32, #tpu.memory_space<vmem>>, %arg2: memref<8x96xf32, #tpu.memory_space<vmem>>, %arg3: memref<1x96xf32, #tpu.memory_space<vmem>>, %arg4: memref<32x64xf32, #tpu.memory_space<vmem>>, %arg5: memref<1x64xf32, #tpu.memory_space<vmem>>, %arg6: memref<64x32xf32, #tpu.memory_space<vmem>>, %arg7: memref<1x32xf32, #tpu.memory_space<vmem>>, %arg8: memref<1x32xf32, #tpu.memory_space<vmem>>, %arg9: memref<1x32xf32, #tpu.memory_space<vmem>>, %arg10: memref<32x64xf32, #tpu.memory_space<vmem>>, %arg11: memref<1x64xf32, #tpu.memory_space<vmem>>, %arg12: memref<64x32xf32, #tpu.memory_space<vmem>>, %arg13: memref<1x32xf32, #tpu.memory_space<vmem>>, %arg14: memref<1x32xf32, #tpu.memory_space<vmem>>, %arg15: memref<1x32xf32, #tpu.memory_space<vmem>>, %arg16: memref<1x32xf32, #tpu.memory_space<vmem>>, %arg17: memref<1x1xf32, #tpu.memory_space<smem>>, %arg18: memref<8x128xf32, #tpu.memory_space<vmem>>) attributes {dimension_semantics = [#tpu.dimension_semantics<parallel>], iteration_bounds = array<i64: 1>, scalar_prefetch = 0 : i64, scratch_operands = 0 : i64, tpu.core_type = #tpu.core_type<tc>, window_params = [{transform_indices = @transform_0, window_bounds = array<i64: 8, 8>}, {pipeline_mode = #tpu.pipeline_mode<synchronous>, transform_indices = @transform_1, window_bounds = array<i64: 8, 96>}, {pipeline_mode = #tpu.pipeline_mode<synchronous>, transform_indices = @transform_2, window_bounds = array<i64: 1, 96>}, {pipeline_mode = #tpu.pipeline_mode<synchronous>, transform_indices = @transform_3, window_bounds = array<i64: 32, 64>}, {pipeline_mode = #tpu.pipeline_mode<synchronous>, transform_indices = @transform_4, window_bounds = array<i64: 1, 64>}, {pipeline_mode = #tpu.pipeline_mode<synchronous>, transform_indices = @transform_5, window_bounds = array<i64: 64, 32>}, {pipeline_mode = #tpu.pipeline_mode<synchronous>, transform_indices = @transform_6, window_bounds = array<i64: 1, 32>}, {pipeline_mode = #tpu.pipeline_mode<synchronous>, transform_indices = @transform_7, window_bounds = array<i64: 1, 32>}, {pipeline_mode = #tpu.pipeline_mode<synchronous>, transform_indices = @transform_8, window_bounds = array<i64: 1, 32>}, {pipeline_mode = #tpu.pipeline_mode<synchronous>, transform_indices = @transform_9, window_bounds = array<i64: 32, 64>}, {pipeline_mode = #tpu.pipeline_mode<synchronous>, transform_indices = @transform_10, window_bounds = array<i64: 1, 64>}, {pipeline_mode = #tpu.pipeline_mode<synchronous>, transform_indices = @transform_11, window_bounds = array<i64: 64, 32>}, {pipeline_mode = #tpu.pipeline_mode<synchronous>, transform_indices = @transform_12, window_bounds = array<i64: 1, 32>}, {pipeline_mode = #tpu.pipeline_mode<synchronous>, transform_indices = @transform_13, window_bounds = array<i64: 1, 32>}, {pipeline_mode = #tpu.pipeline_mode<synchronous>, transform_indices = @transform_14, window_bounds = array<i64: 1, 32>}, {pipeline_mode = #tpu.pipeline_mode<synchronous>, transform_indices = @transform_15, window_bounds = array<i64: 1, 32>}, {transform_indices = @transform_16, window_bounds = array<i64: 1, 1>}, {transform_indices = @transform_17, window_bounds = array<i64: 8, 128>}]} {
    %c0 = arith.constant 0 : index
    %c0_0 = arith.constant 0 : index
    %0 = vector.load %arg1[%c0, %c0_0] : memref<8x8xf32, #tpu.memory_space<vmem>>, vector<8x8xf32>
    %c0_1 = arith.constant 0 : index
    %c0_2 = arith.constant 0 : index
    %1 = vector.load %arg2[%c0_1, %c0_2] : memref<8x96xf32, #tpu.memory_space<vmem>>, vector<8x96xf32>
    %cst = arith.constant dense<0.000000e+00> : vector<8x96xf32>
    %2 = tpu.matmul %0, %1, %cst {dimension_numbers = #tpu.dot_dimension_numbers<[1], [0], [0], [1], [0, 0, 1, 1], [], []>} : vector<8x8xf32>, vector<8x96xf32>, vector<8x96xf32> -> vector<8x96xf32>
    %c0_3 = arith.constant 0 : index
    %c0_4 = arith.constant 0 : index
    %3 = vector.load %arg3[%c0_3, %c0_4] : memref<1x96xf32, #tpu.memory_space<vmem>>, vector<1x96xf32>
    %4 = vector.broadcast %3 : vector<1x96xf32> to vector<8x96xf32>
    %5 = arith.addf %2, %4 : vector<8x96xf32>
    %cst_5 = arith.constant 0.000000e+00 : f32
    %6 = vector.broadcast %cst_5 : f32 to vector<8x96xf32>
    %7 = arith.maximumf %5, %6 : vector<8x96xf32>
    %8 = vector.extract_strided_slice %7 {offsets = [0, 0], sizes = [8, 32], strides = [1, 1]} : vector<8x96xf32> to vector<8x32xf32>
    %9 = vector.extract_strided_slice %7 {offsets = [0, 32], sizes = [8, 32], strides = [1, 1]} : vector<8x96xf32> to vector<8x32xf32>
    %10 = vector.extract_strided_slice %7 {offsets = [0, 64], sizes = [8, 32], strides = [1, 1]} : vector<8x96xf32> to vector<8x32xf32>
    %11 = arith.subf %9, %8 : vector<8x32xf32>
    %c0_6 = arith.constant 0 : index
    %c0_7 = arith.constant 0 : index
    %12 = vector.load %arg4[%c0_6, %c0_7] : memref<32x64xf32, #tpu.memory_space<vmem>>, vector<32x64xf32>
    %c0_8 = arith.constant 0 : index
    %c0_9 = arith.constant 0 : index
    %13 = vector.load %arg5[%c0_8, %c0_9] : memref<1x64xf32, #tpu.memory_space<vmem>>, vector<1x64xf32>
    %c0_10 = arith.constant 0 : index
    %c0_11 = arith.constant 0 : index
    %14 = vector.load %arg6[%c0_10, %c0_11] : memref<64x32xf32, #tpu.memory_space<vmem>>, vector<64x32xf32>
    %c0_12 = arith.constant 0 : index
    %c0_13 = arith.constant 0 : index
    %15 = vector.load %arg7[%c0_12, %c0_13] : memref<1x32xf32, #tpu.memory_space<vmem>>, vector<1x32xf32>
    %c0_14 = arith.constant 0 : index
    %c0_15 = arith.constant 0 : index
    %16 = vector.load %arg8[%c0_14, %c0_15] : memref<1x32xf32, #tpu.memory_space<vmem>>, vector<1x32xf32>
    %c0_16 = arith.constant 0 : index
    %c0_17 = arith.constant 0 : index
    %17 = vector.load %arg9[%c0_16, %c0_17] : memref<1x32xf32, #tpu.memory_space<vmem>>, vector<1x32xf32>
    %cst_18 = arith.constant dense<0.000000e+00> : vector<8x64xf32>
    %18 = tpu.matmul %10, %12, %cst_18 {dimension_numbers = #tpu.dot_dimension_numbers<[1], [0], [0], [1], [0, 0, 1, 1], [], []>} : vector<8x32xf32>, vector<32x64xf32>, vector<8x64xf32> -> vector<8x64xf32>
    %19 = vector.broadcast %13 : vector<1x64xf32> to vector<8x64xf32>
    %20 = arith.addf %18, %19 : vector<8x64xf32>
    %cst_19 = arith.constant 0.000000e+00 : f32
    %21 = vector.broadcast %cst_19 : f32 to vector<8x64xf32>
    %22 = arith.maximumf %20, %21 : vector<8x64xf32>
    %cst_20 = arith.constant dense<0.000000e+00> : vector<8x32xf32>
    %23 = tpu.matmul %22, %14, %cst_20 {dimension_numbers = #tpu.dot_dimension_numbers<[1], [0], [0], [1], [0, 0, 1, 1], [], []>} : vector<8x64xf32>, vector<64x32xf32>, vector<8x32xf32> -> vector<8x32xf32>
    %24 = vector.broadcast %15 : vector<1x32xf32> to vector<8x32xf32>
    %25 = arith.addf %23, %24 : vector<8x32xf32>
    %cst_21 = arith.constant 0.000000e+00 : f32
    %26 = vector.broadcast %cst_21 : f32 to vector<8x32xf32>
    %27 = arith.maximumf %25, %26 : vector<8x32xf32>
    %28 = arith.mulf %27, %11 : vector<8x32xf32>
    %29 = arith.addf %8, %28 : vector<8x32xf32>
    %cst_22 = arith.constant dense<0.000000e+00> : vector<8xf32>
    %30 = vector.multi_reduction <add>, %29, %cst_22 [1] : vector<8x32xf32> to vector<8xf32>
    %31 = vector.shape_cast %30 : vector<8xf32> to vector<8x1xf32>
    %cst_23 = arith.constant 3.200000e+01 : f32
    %32 = vector.broadcast %cst_23 : f32 to vector<8x1xf32>
    %33 = arith.divf %31, %32 : vector<8x1xf32>
    %34 = arith.mulf %29, %29 : vector<8x32xf32>
    %cst_24 = arith.constant dense<0.000000e+00> : vector<8xf32>
    %35 = vector.multi_reduction <add>, %34, %cst_24 [1] : vector<8x32xf32> to vector<8xf32>
    %36 = vector.shape_cast %35 : vector<8xf32> to vector<8x1xf32>
    %cst_25 = arith.constant 3.200000e+01 : f32
    %37 = vector.broadcast %cst_25 : f32 to vector<8x1xf32>
    %38 = arith.divf %36, %37 : vector<8x1xf32>
    %39 = arith.mulf %33, %33 : vector<8x1xf32>
    %40 = arith.subf %38, %39 : vector<8x1xf32>
    %cst_26 = arith.constant 9.99999974E-6 : f32
    %41 = vector.broadcast %cst_26 : f32 to vector<8x1xf32>
    %42 = arith.addf %40, %41 : vector<8x1xf32>
    %43 = math.rsqrt %42 : vector<8x1xf32>
    %44 = vector.broadcast %33 : vector<8x1xf32> to vector<8x32xf32>
    %45 = arith.subf %29, %44 : vector<8x32xf32>
    %46 = vector.broadcast %43 : vector<8x1xf32> to vector<8x32xf32>
    %47 = arith.mulf %45, %46 : vector<8x32xf32>
    %48 = vector.broadcast %16 : vector<1x32xf32> to vector<8x32xf32>
    %49 = arith.mulf %47, %48 : vector<8x32xf32>
    %50 = vector.broadcast %17 : vector<1x32xf32> to vector<8x32xf32>
    %51 = arith.addf %49, %50 : vector<8x32xf32>
    %c0_27 = arith.constant 0 : index
    %c0_28 = arith.constant 0 : index
    %52 = vector.load %arg10[%c0_27, %c0_28] : memref<32x64xf32, #tpu.memory_space<vmem>>, vector<32x64xf32>
    %c0_29 = arith.constant 0 : index
    %c0_30 = arith.constant 0 : index
    %53 = vector.load %arg11[%c0_29, %c0_30] : memref<1x64xf32, #tpu.memory_space<vmem>>, vector<1x64xf32>
    %c0_31 = arith.constant 0 : index
    %c0_32 = arith.constant 0 : index
    %54 = vector.load %arg12[%c0_31, %c0_32] : memref<64x32xf32, #tpu.memory_space<vmem>>, vector<64x32xf32>
    %c0_33 = arith.constant 0 : index
    %c0_34 = arith.constant 0 : index
    %55 = vector.load %arg13[%c0_33, %c0_34] : memref<1x32xf32, #tpu.memory_space<vmem>>, vector<1x32xf32>
    %c0_35 = arith.constant 0 : index
    %c0_36 = arith.constant 0 : index
    %56 = vector.load %arg14[%c0_35, %c0_36] : memref<1x32xf32, #tpu.memory_space<vmem>>, vector<1x32xf32>
    %c0_37 = arith.constant 0 : index
    %c0_38 = arith.constant 0 : index
    %57 = vector.load %arg15[%c0_37, %c0_38] : memref<1x32xf32, #tpu.memory_space<vmem>>, vector<1x32xf32>
    %cst_39 = arith.constant dense<0.000000e+00> : vector<8x64xf32>
    %58 = tpu.matmul %51, %52, %cst_39 {dimension_numbers = #tpu.dot_dimension_numbers<[1], [0], [0], [1], [0, 0, 1, 1], [], []>} : vector<8x32xf32>, vector<32x64xf32>, vector<8x64xf32> -> vector<8x64xf32>
    %59 = vector.broadcast %53 : vector<1x64xf32> to vector<8x64xf32>
    %60 = arith.addf %58, %59 : vector<8x64xf32>
    %cst_40 = arith.constant 0.000000e+00 : f32
    %61 = vector.broadcast %cst_40 : f32 to vector<8x64xf32>
    %62 = arith.maximumf %60, %61 : vector<8x64xf32>
    %cst_41 = arith.constant dense<0.000000e+00> : vector<8x32xf32>
    %63 = tpu.matmul %62, %54, %cst_41 {dimension_numbers = #tpu.dot_dimension_numbers<[1], [0], [0], [1], [0, 0, 1, 1], [], []>} : vector<8x64xf32>, vector<64x32xf32>, vector<8x32xf32> -> vector<8x32xf32>
    %64 = vector.broadcast %55 : vector<1x32xf32> to vector<8x32xf32>
    %65 = arith.addf %63, %64 : vector<8x32xf32>
    %cst_42 = arith.constant 0.000000e+00 : f32
    %66 = vector.broadcast %cst_42 : f32 to vector<8x32xf32>
    %67 = arith.maximumf %65, %66 : vector<8x32xf32>
    %68 = arith.mulf %67, %11 : vector<8x32xf32>
    %69 = arith.addf %8, %68 : vector<8x32xf32>
    %cst_43 = arith.constant dense<0.000000e+00> : vector<8xf32>
    %70 = vector.multi_reduction <add>, %69, %cst_43 [1] : vector<8x32xf32> to vector<8xf32>
    %71 = vector.shape_cast %70 : vector<8xf32> to vector<8x1xf32>
    %cst_44 = arith.constant 3.200000e+01 : f32
    %72 = vector.broadcast %cst_44 : f32 to vector<8x1xf32>
    %73 = arith.divf %71, %72 : vector<8x1xf32>
    %74 = arith.mulf %69, %69 : vector<8x32xf32>
    %cst_45 = arith.constant dense<0.000000e+00> : vector<8xf32>
    %75 = vector.multi_reduction <add>, %74, %cst_45 [1] : vector<8x32xf32> to vector<8xf32>
    %76 = vector.shape_cast %75 : vector<8xf32> to vector<8x1xf32>
    %cst_46 = arith.constant 3.200000e+01 : f32
    %77 = vector.broadcast %cst_46 : f32 to vector<8x1xf32>
    %78 = arith.divf %76, %77 : vector<8x1xf32>
    %79 = arith.mulf %73, %73 : vector<8x1xf32>
    %80 = arith.subf %78, %79 : vector<8x1xf32>
    %cst_47 = arith.constant 9.99999974E-6 : f32
    %81 = vector.broadcast %cst_47 : f32 to vector<8x1xf32>
    %82 = arith.addf %80, %81 : vector<8x1xf32>
    %83 = math.rsqrt %82 : vector<8x1xf32>
    %84 = vector.broadcast %73 : vector<8x1xf32> to vector<8x32xf32>
    %85 = arith.subf %69, %84 : vector<8x32xf32>
    %86 = vector.broadcast %83 : vector<8x1xf32> to vector<8x32xf32>
    %87 = arith.mulf %85, %86 : vector<8x32xf32>
    %88 = vector.broadcast %56 : vector<1x32xf32> to vector<8x32xf32>
    %89 = arith.mulf %87, %88 : vector<8x32xf32>
    %90 = vector.broadcast %57 : vector<1x32xf32> to vector<8x32xf32>
    %91 = arith.addf %89, %90 : vector<8x32xf32>
    %c0_48 = arith.constant 0 : index
    %c0_49 = arith.constant 0 : index
    %92 = vector.load %arg16[%c0_48, %c0_49] : memref<1x32xf32, #tpu.memory_space<vmem>>, vector<1x32xf32>
    %93 = vector.broadcast %92 : vector<1x32xf32> to vector<8x32xf32>
    %94 = arith.mulf %91, %93 : vector<8x32xf32>
    %cst_50 = arith.constant dense<0.000000e+00> : vector<8xf32>
    %95 = vector.multi_reduction <add>, %94, %cst_50 [1] : vector<8x32xf32> to vector<8xf32>
    %96 = vector.shape_cast %95 : vector<8xf32> to vector<8x1xf32>
    %c0_51 = arith.constant 0 : index
    %c0_52 = arith.constant 0 : index
    %97 = memref.load %arg17[%c0_51, %c0_52] : memref<1x1xf32, #tpu.memory_space<smem>>
    %98 = vector.broadcast %97 : f32 to vector<8x1xf32>
    %99 = arith.addf %96, %98 : vector<8x1xf32>
    %100 = vector.shape_cast %99 : vector<8x1xf32> to vector<8x1xf32>
    %101 = vector.broadcast %100 : vector<8x1xf32> to vector<8x128xf32>
    %c0_53 = arith.constant 0 : index
    %c0_54 = arith.constant 0 : index
    %102 = vector.load %arg18[%c0_53, %c0_54] : memref<8x128xf32, #tpu.memory_space<vmem>>, vector<8x128xf32>
    tpu.vector_store %arg18[%c0_53, %c0_54], %101 {strides = array<i32>} : memref<8x128xf32, #tpu.memory_space<vmem>>, vector<8x128xf32>,
    return
  }
  func.func @transform_0(%arg0: i32) -> (i32, i32) {
    %c0_i32 = arith.constant 0 : i32
    %c0_i32_0 = arith.constant 0 : i32
    return %arg0, %c0_i32 : i32, i32
  }
  func.func @transform_1(%arg0: i32) -> (i32, i32) {
    %c0_i32 = arith.constant 0 : i32
    %c0_i32_0 = arith.constant 0 : i32
    %c0_i32_1 = arith.constant 0 : i32
    return %c0_i32, %c0_i32_0 : i32, i32
  }
  func.func @transform_2(%arg0: i32) -> (i32, i32) {
    %c0_i32 = arith.constant 0 : i32
    %c0_i32_0 = arith.constant 0 : i32
    %c0_i32_1 = arith.constant 0 : i32
    return %c0_i32, %c0_i32_0 : i32, i32
  }
  func.func @transform_3(%arg0: i32) -> (i32, i32) {
    %c0_i32 = arith.constant 0 : i32
    %c0_i32_0 = arith.constant 0 : i32
    %c0_i32_1 = arith.constant 0 : i32
    return %c0_i32, %c0_i32_0 : i32, i32
  }
  func.func @transform_4(%arg0: i32) -> (i32, i32) {
    %c0_i32 = arith.constant 0 : i32
    %c0_i32_0 = arith.constant 0 : i32
    %c0_i32_1 = arith.constant 0 : i32
    return %c0_i32, %c0_i32_0 : i32, i32
  }
  func.func @transform_5(%arg0: i32) -> (i32, i32) {
    %c0_i32 = arith.constant 0 : i32
    %c0_i32_0 = arith.constant 0 : i32
    %c0_i32_1 = arith.constant 0 : i32
    return %c0_i32, %c0_i32_0 : i32, i32
  }
  func.func @transform_6(%arg0: i32) -> (i32, i32) {
    %c0_i32 = arith.constant 0 : i32
    %c0_i32_0 = arith.constant 0 : i32
    %c0_i32_1 = arith.constant 0 : i32
    return %c0_i32, %c0_i32_0 : i32, i32
  }
  func.func @transform_7(%arg0: i32) -> (i32, i32) {
    %c0_i32 = arith.constant 0 : i32
    %c0_i32_0 = arith.constant 0 : i32
    %c0_i32_1 = arith.constant 0 : i32
    return %c0_i32, %c0_i32_0 : i32, i32
  }
  func.func @transform_8(%arg0: i32) -> (i32, i32) {
    %c0_i32 = arith.constant 0 : i32
    %c0_i32_0 = arith.constant 0 : i32
    %c0_i32_1 = arith.constant 0 : i32
    return %c0_i32, %c0_i32_0 : i32, i32
  }
  func.func @transform_9(%arg0: i32) -> (i32, i32) {
    %c0_i32 = arith.constant 0 : i32
    %c0_i32_0 = arith.constant 0 : i32
    %c0_i32_1 = arith.constant 0 : i32
    return %c0_i32, %c0_i32_0 : i32, i32
  }
  func.func @transform_10(%arg0: i32) -> (i32, i32) {
    %c0_i32 = arith.constant 0 : i32
    %c0_i32_0 = arith.constant 0 : i32
    %c0_i32_1 = arith.constant 0 : i32
    return %c0_i32, %c0_i32_0 : i32, i32
  }
  func.func @transform_11(%arg0: i32) -> (i32, i32) {
    %c0_i32 = arith.constant 0 : i32
    %c0_i32_0 = arith.constant 0 : i32
    %c0_i32_1 = arith.constant 0 : i32
    return %c0_i32, %c0_i32_0 : i32, i32
  }
  func.func @transform_12(%arg0: i32) -> (i32, i32) {
    %c0_i32 = arith.constant 0 : i32
    %c0_i32_0 = arith.constant 0 : i32
    %c0_i32_1 = arith.constant 0 : i32
    return %c0_i32, %c0_i32_0 : i32, i32
  }
  func.func @transform_13(%arg0: i32) -> (i32, i32) {
    %c0_i32 = arith.constant 0 : i32
    %c0_i32_0 = arith.constant 0 : i32
    %c0_i32_1 = arith.constant 0 : i32
    return %c0_i32, %c0_i32_0 : i32, i32
  }
  func.func @transform_14(%arg0: i32) -> (i32, i32) {
    %c0_i32 = arith.constant 0 : i32
    %c0_i32_0 = arith.constant 0 : i32
    %c0_i32_1 = arith.constant 0 : i32
    return %c0_i32, %c0_i32_0 : i32, i32
  }
  func.func @transform_15(%arg0: i32) -> (i32, i32) {
    %c0_i32 = arith.constant 0 : i32
    %c0_i32_0 = arith.constant 0 : i32
    %c0_i32_1 = arith.constant 0 : i32
    return %c0_i32, %c0_i32_0 : i32, i32
  }
  func.func @transform_16(%arg0: i32) -> (i32, i32) {
    %c0_i32 = arith.constant 0 : i32
    %c0_i32_0 = arith.constant 0 : i32
    %c0_i32_1 = arith.constant 0 : i32
    return %c0_i32, %c0_i32_0 : i32, i32
  }
  func.func @transform_17(%arg0: i32) -> (i32, i32) {
    %c0_i32 = arith.constant 0 : i32
    %c0_i32_0 = arith.constant 0 : i32
    return %arg0, %c0_i32 : i32, i32
  }
}

</mosaic_0001>

<bundles_post_ra>
// kernel: transformer_forward.1
= control target key start
LH: loop header
LB: loop body
LE: loop exit
PB: predicated region body
PF: predicated region fallthrough
CT: control target
= control target key end

     0   :  { %vm66_vm0 = vcmask 64512   ;;  %v743_v0 = vmov 0.0   ;;  %vm744_vm1 = vmmov 0   ;;  %v745_v3 = vmov 0.0|0.0   ;;  %s746_s25 = smov 64   ;;  %s748_s22 = smov 96   ;;  %s996_s1 = inlined_call_operand.vmem [shape: f32[8,96], index: 1, kind: input, shape index: {}]   ;;  %s997_s0 = inlined_call_operand.vmem [shape: f32[8,8], index: 0, kind: input, shape index: {}]   ;;  %s998_s3 = inlined_call_operand.vmem [shape: f32[32,64], index: 3, kind: input, shape index: {}]   ;;  %s999_s2 = inlined_call_operand.vmem [shape: f32[1,96], index: 2, kind: input, shape index: {}]   ;;  %s1000_s5 = inlined_call_operand.vmem [shape: f32[64,32], index: 5, kind: input, shape index: {}]   ;;  %s1001_s4 = inlined_call_operand.vmem [shape: f32[1,64], index: 4, kind: input, shape index: {}]   ;;  %s1002_s6 = inlined_call_operand.vmem [shape: f32[1,32], index: 6, kind: input, shape index: {}]   ;;  %s1003_s9 = inlined_call_operand.vmem [shape: f32[32,64], index: 9, kind: input, shape index: {}]   ;;  %s1004_s7 = inlined_call_operand.vmem [shape: f32[1,32], index: 7, kind: input, shape index: {}]   ;;  %s1005_s11 = inlined_call_operand.vmem [shape: f32[64,32], index: 11, kind: input, shape index: {}]   ;;  %s1006_s8 = inlined_call_operand.vmem [shape: f32[1,32], index: 8, kind: input, shape index: {}]   ;;  %s1007_s10 = inlined_call_operand.vmem [shape: f32[1,64], index: 10, kind: input, shape index: {}]   ;;  %s1008_s12 = inlined_call_operand.vmem [shape: f32[1,32], index: 12, kind: input, shape index: {}]   ;;  %s1009_s13 = inlined_call_operand.vmem [shape: f32[1,32], index: 13, kind: input, shape index: {}]   ;;  %s1010_s14 = inlined_call_operand.vmem [shape: f32[1,32], index: 14, kind: input, shape index: {}]   ;;  %s1011_s15 = inlined_call_operand.vmem [shape: f32[1,32], index: 15, kind: input, shape index: {}]   ;;  %s1012_s16 = inlined_call_operand.<no memory space> [shape: f32[1,1], index: 16, kind: input, shape index: {}]   ;;  %s1013_s17 = inlined_call_operand.vmem [shape: f32[8,128], index: 17, kind: output, shape index: {}]  }
   0x1   :  { %1014 = sst [smem:[#allocation3_spill]] %s996_s1  ;;  %632 = vmatprep.subr.mxu0 %v743_v0  ;;  %634 = vmatprep.mubr.msk.f32.mxu0 %vm744_vm1, %v743_v0  ;;  %v146_v4 = vld [vmem:[%s998_s3] sm:$0xff]  ;;  %v147_v5 = vld [vmem:[%s998_s3 + $0x8] sm:$0xff]  ;;  %v148_v6 = vld [vmem:[%s998_s3 + $0x10] sm:$0xff]  ;;  %vm170_vm2 = vcmask 261120   ;;  %vm250_vm3 = vcmask 523264  }
   0x2   :  { %1015 = sst [smem:[#allocation4_spill]] %s997_s0  ;;  %s1016_s26 = sld [smem:[#allocation3_spill]]  ;;  %675 = vmatprep.mubr.msk.f32.mxu1 %vm744_vm1, %v743_v0  ;;  %715 = vmatprep.subr.bf16.mxu1 %v745_v3  ;;  %v698_v7 = vpack.c.bf16 %v147_v5, %v146_v4  ;;  %v149_v8 = vld [vmem:[%s998_s3 + $0x18] sm:$0xff]  ;;  %v587_v10 = vld [vmem:[%s999_s2] ss:$0 sm:$0xff]  ;;  %v152_v16 = vld [vmem:[%s1000_s5 + $0x8] sm:$0xff] }
   0x3   :  { %s1017_s29 = sld [smem:[#allocation4_spill]]  ;;  %v701_v9 = vpack.c.bf16 %v149_v8, %v148_v6  ;;  %s747_s3 = smov 32   ;;  %v151_v15 = vld [vmem:[%s1000_s5] sm:$0xff]  ;;  %v153_v18 = vld [vmem:[%s1000_s5 + $0x10] sm:$0xff]  ;;  %v154_v19 = vld [vmem:[%s1000_s5 + $0x18] sm:$0xff] }
   0x4   :  { %v704_v17 = vpack.c.bf16 %v152_v16, %v151_v15  ;;  %v707_v21 = vpack.c.bf16 %v154_v19, %v153_v18  ;;  %v155_v22 = vld [vmem:[%s1000_s5 + $0x20] sm:$0xff]  ;;  %v156_v23 = vld [vmem:[%s1000_s5 + $0x28] sm:$0xff]  ;;  %v157_v27 = vld [vmem:[%s1000_s5 + $0x30] sm:$0xff] }
   0x5   :  { %v710_v26 = vpack.c.bf16 %v156_v23, %v155_v22  ;;  %v158_v28 = vld [vmem:[%s1000_s5 + $0x38] sm:$0xff]  ;;  %v589_v30 = vld [vmem:[%s1001_s4] ss:$0 sm:$0xff]  ;;  %v362_v47 = vld [vmem:[%s1003_s9 + $0x8] sm:$0xff] }
   0x6   :  { %v713_v29 = vpack.c.bf16 %v158_v28, %v157_v27  ;;  %v591_v35 = vld [vmem:[%s1002_s6] ss:$0 sm:$0xff]  ;;  %v363_v48 = vld [vmem:[%s1003_s9 + $0x10] sm:$0xff]  ;;  %v364_v50 = vld [vmem:[%s1003_s9 + $0x18] sm:$0xff] }
   0x7   :  { %v361_v46 = vld [vmem:[%s1003_s9] sm:$0xff]  ;;  %v719_v51 = vpack.c.bf16 %v364_v50, %v363_v48  ;;  %v369_v8 = vld [vmem:[%s1005_s11 + $0x18] sm:$0xff] }
   0x8   :  { %v58_v1 = vld [vmem:[%s1016_s26] sm:$0xff]  ;;  %v716_v49 = vpack.c.bf16 %v362_v47, %v361_v46  ;;  %v580_v46 = vstv %s1012_s16 }
   0x9   :  { %v57_v2 = vld [vmem:[%s1017_s29] sm:$0xff]  ;;  %633 = vmatpush3.msra.mxu0 %v58_v1  ;;  %v367_v1 = vld [vmem:[%s1005_s11 + $0x8] sm:$0xff] }
   0xa   :  { %635 = vmatmul.mubr.msk.f32.vlgmr.msra.gmra.mrb[0].mxu0 %vm66_vm0, %v57_v2  ;;  %697 = vmatprep.subr.bf16.mxu0 %v745_v3  ;;  %v593_v61 = vld [vmem:[%s1004_s7] ss:$0 sm:$0xff] }
   0xb   :  { %645 = vmatprep.mubr.msk.f32.mxu0 %vm744_vm1, %v743_v0  ;;  %699 = vmatpush3.bf16.msra.mxu0 %v698_v7  ;;  %v366_v63 = vld [vmem:[%s1005_s11] sm:$0xff]  ;;  %v368_v7 = vld [vmem:[%s1005_s11 + $0x10] sm:$0xff] }
   0xc   :  { %700 = vmatprep.subr.bf16.mxu0 %v745_v3  ;;  %717 = vmatpush3.bf16.msra.mxu1 %v716_v49  ;;  %v594_v2 = vld [vmem:[%s1006_s8] ss:$0 sm:$0xff]  ;;  %v722_v5 = vpack.c.bf16 %v367_v1, %v366_v63 }
   0xd   :  { %718 = vmatprep.subr.bf16.mxu1 %v745_v3  ;;  %v595_v16 = vld [vmem:[%s1007_s10] ss:$0 sm:$0xff] }
   0xf   :  { %702 = vmatpush3.bf16.msra.mxu0 %v701_v9  ;;  %v725_v9 = vpack.c.bf16 %v369_v8, %v368_v7 }
  0x10   :  { %703 = vmatprep.subr.bf16.mxu0 %v745_v3  ;;  %720 = vmatpush3.bf16.msra.mxu1 %v719_v51 }
  0x11   :  { %721 = vmatprep.subr.bf16.mxu1 %v745_v3 }
  0xdd   :  { %v136_v11 = vpop.f32.mrb[0].mxu0 }
  0xde   :  { %v137_v12 = vadd.f32 %v587_v10, %v136_v11  ;;  %v636_v13 = vpop.f32.mrb[1].mxu0  ;;  %v370_v10 = vld [vmem:[%s1005_s11 + $0x20] sm:$0xff]  ;;  %v371_v11 = vld [vmem:[%s1005_s11 + $0x28] sm:$0xff] }
  0xdf   :  { %v373_v13 = vld [vmem:[%s1005_s11 + $0x38] sm:$0xff] }
  0xe0   :  { %v871_v14 = vmax.f32 %v137_v12, 0.0  ;;  %v728_v12 = vpack.c.bf16 %v371_v11, %v370_v10 }
  0xe2   :  { %168 = vrot.lane.b32.xlu0 %v871_v14, %s746_s25 }
  0xe6   :  { %142 = vrot.lane.b32.xlu0 %v871_v14, %s747_s3 }
 0x154   :  { %v169_v20 = vpop.permute.xlu0 %168 }
 0x155   :  { %646 = vmatmul.mubr.msk.f32.vlgmr.msra.gmra.mrb[2].mxu0 %vm170_vm2, %v169_v20 }
 0x156   :  { %705 = vmatpush3.bf16.msra.mxu0 %v704_v17  ;;  %664 = vmatprep.mubr.msk.f32.mxu0 %vm744_vm1, %v743_v0 }
 0x157   :  { %706 = vmatprep.subr.bf16.mxu0 %v745_v3 }
 0x158   :  { %v143_v24 = vpop.permute.xlu0 %142 }
 0x159   :  { %v145_v25 = vsub.f32 %v871_v14, %v143_v24 }
 0x15a   :  { %708 = vmatpush3.bf16.msra.mxu0 %v707_v21 }
 0x15b   :  { %326 = vrot.lane.b32.xlu1 %v145_v25, %s748_s22  ;;  %709 = vmatprep.subr.bf16.mxu0 %v745_v3 }
 0x15e   :  { %711 = vmatpush3.bf16.msra.mxu0 %v710_v26 }
 0x15f   :  { %712 = vmatprep.subr.bf16.mxu0 %v745_v3 }
 0x162   :  { %714 = vmatpush3.bf16.msra.mxu0 %v713_v29 }
 0x1cd   :  { %v913_v40 = vpop.permute.xlu1 %326 }
 0x228   :  { %v239_v31 = vpop.f32.mrb[2].mxu0 }
 0x229   :  { %v240_v32 = vadd.f32 %v589_v30, %v239_v31  ;;  %v647_v33 = vpop.f32.mrb[3].mxu0 }
 0x22b   :  { %v243_v34 = vmax.f32 %v240_v32, 0.0 }
 0x22d   :  { %665 = vmatmul.mubr.msk.f32.vlgmr.msra.gmra.mrb[4].mxu0 %vm250_vm3, %v243_v34 }
 0x300   :  { %v320_v36 = vpop.f32.mrb[4].mxu0 }
 0x301   :  { %v321_v37 = vadd.f32 %v591_v35, %v320_v36  ;;  %v666_v38 = vpop.f32.mrb[5].mxu0 }
 0x303   :  { %v324_v39 = vmax.f32 %v321_v37, 0.0 }
 0x305   :  { %v329_v41 = vmul.f32 %v913_v40, %v324_v39 }
 0x307   :  { %v330_v42 = vadd.f32 %v329_v41, %v871_v14 }
 0x309   :  { %v331_v43 = vsel %vm170_vm2, %v330_v42, 0.0  ;;  %v336_v44 = vmul.f32 %v330_v42, %v330_v42 }
 0x30a   :  { %332 = vadd.xlane.f32.xlu1 %v331_v43 }
 0x30b   :  { %v337_v45 = vsel %vm170_vm2, %v336_v44, 0.0 }
 0x30c   :  { %338 = vadd.xlane.f32.xlu0 %v337_v45 }
 0x397   :  { %v333_v52 = vpop.xlane.xlu1 %332 }
 0x398   :  { %v335_v53 = vmul.f32 0.03125, %v333_v52 }
 0x399   :  { %v339_v54 = vpop.xlane.xlu0 %338 }
 0x39a   :  { %v341_v55 = vmul.f32 %v335_v53, %v335_v53  ;;  %v340_v56 = vmul.f32 0.03125, %v339_v54  ;;  %v345_v59 = vsub.f32 %v330_v42, %v335_v53  ;;  %v601_v42 = vld [vmem:[%s1011_s15] ss:$0 sm:$0xff] }
 0x39c   :  { %v342_v57 = vsub.f32 %v340_v56, %v341_v55 }
 0x39e   :  { %v343_v58 = vadd.f32 1e-05, %v342_v57 }
 0x3a0   :  { %739 = vrsqrt.f32 %v343_v58 }
 0x3aa   :  { %v740_v60 = vpop.eup %739 }
 0x3ab   :  { %v346_v62 = vmul.f32 %v740_v60, %v345_v59 }
 0x3ad   :  { %v353_v4 = vmul.f32 %v593_v61, %v346_v62 }
 0x3af   :  { %v360_v6 = vadd.f32 %v594_v2, %v353_v4 }
 0x3b1   :  { %676 = vmatmul.mubr.msk.f32.vlgmr.msra.gmra.mrb[0].mxu1 %vm170_vm2, %v360_v6 }
 0x3b2   :  { %723 = vmatpush3.bf16.msra.mxu1 %v722_v5  ;;  %694 = vmatprep.mubr.msk.f32.mxu1 %vm744_vm1, %v743_v0  ;;  %v372_v0 = vld [vmem:[%s1005_s11 + $0x30] sm:$0xff] }
 0x3b3   :  { %724 = vmatprep.subr.bf16.mxu1 %v745_v3  ;;  %v731_v15 = vpack.c.bf16 %v373_v13, %v372_v0 }
 0x3b6   :  { %726 = vmatpush3.bf16.msra.mxu1 %v725_v9 }
 0x3b7   :  { %727 = vmatprep.subr.bf16.mxu1 %v745_v3 }
 0x3ba   :  { %729 = vmatpush3.bf16.msra.mxu1 %v728_v12 }
 0x3bb   :  { %730 = vmatprep.subr.bf16.mxu1 %v745_v3  ;;  %v597_v3 = vld [vmem:[%s1008_s12] ss:$0 sm:$0xff] }
 0x3be   :  { %732 = vmatpush3.bf16.msra.mxu1 %v731_v15 }
 0x484   :  { %v452_v17 = vpop.f32.mrb[0].mxu1 }
 0x485   :  { %v453_v18 = vadd.f32 %v595_v16, %v452_v17  ;;  %v677_v19 = vpop.f32.mrb[1].mxu1 }
 0x487   :  { %v456_v20 = vmax.f32 %v453_v18, 0.0 }
 0x489   :  { %695 = vmatmul.mubr.msk.f32.vlgmr.msra.gmra.mrb[2].mxu1 %vm250_vm3, %v456_v20 }
 0x55c   :  { %v532_v21 = vpop.f32.mrb[2].mxu1 }
 0x55d   :  { %v533_v22 = vadd.f32 %v597_v3, %v532_v21  ;;  %v696_v23 = vpop.f32.mrb[3].mxu1 }
 0x55f   :  { %v536_v24 = vmax.f32 %v533_v22, 0.0 }
 0x561   :  { %v537_v25 = vmul.f32 %v536_v24, %v913_v40  ;;  %v600_v40 = vld [vmem:[%s1010_s14] ss:$0 sm:$0xff] }
 0x563   :  { %v538_v26 = vadd.f32 %v537_v25, %v871_v14  ;;  %v599_v14 = vld [vmem:[%s1009_s13] ss:$0 sm:$0xff] }
 0x565   :  { %v539_v27 = vsel %vm170_vm2, %v538_v26, 0.0  ;;  %v543_v28 = vmul.f32 %v538_v26, %v538_v26 }
 0x566   :  { %540 = vadd.xlane.f32.xlu0 %v539_v27 }
 0x567   :  { %v544_v29 = vsel %vm170_vm2, %v543_v28, 0.0 }
 0x568   :  { %545 = vadd.xlane.f32.xlu1 %v544_v29 }
 0x5f3   :  { %v541_v30 = vpop.xlane.xlu0 %540 }
 0x5f4   :  { %v542_v31 = vmul.f32 0.03125, %v541_v30 }
 0x5f5   :  { %v546_v32 = vpop.xlane.xlu1 %545 }
 0x5f6   :  { %v548_v33 = vmul.f32 %v542_v31, %v542_v31  ;;  %v547_v34 = vmul.f32 0.03125, %v546_v32  ;;  %v552_v37 = vsub.f32 %v538_v26, %v542_v31 }
 0x5f8   :  { %v549_v35 = vsub.f32 %v547_v34, %v548_v33 }
 0x5fa   :  { %v550_v36 = vadd.f32 1e-05, %v549_v35 }
 0x5fc   :  { %741 = vrsqrt.f32 %v550_v36 }
 0x606   :  { %v742_v38 = vpop.eup %741 }
 0x607   :  { %v553_v39 = vmul.f32 %v742_v38, %v552_v37 }
 0x609   :  { %v560_v41 = vmul.f32 %v599_v14, %v553_v39 }
 0x60b   :  { %v567_v43 = vadd.f32 %v600_v40, %v560_v41 }
 0x60d   :  { %v575_v44 = vmul.f32 %v601_v42, %v567_v43 }
 0x60f   :  { %v576_v45 = vsel %vm170_vm2, %v575_v44, 0.0 }
 0x610   :  { %577 = vadd.xlane.f32.xlu0 %v576_v45 }
 0x69d   :  { %v578_v47 = vpop.xlane.xlu0 %577 }
 0x69e   :  { %v581_v48 = vadd.f32 %v580_v46, %v578_v47 }
 0x6a0   :  { %582 = vst [vmem:[%s1013_s17] sm:$0xff] %v581_v48 }

</bundles_post_ra>
